<compile_context>
chip_gen: v7x
topology: tpu7x:2x2x1
jax: 0.10.0
libtpu: 0.0.40
codegen_flags: <defaults>
</compile_context>

<pallas_src>
import functools

import jax
import jax.numpy as jnp
from jax.experimental import pallas as pl
from jax.experimental.pallas import tpu as pltpu

_MIB = 1024 * 1024


# --------------------------------------------------------------------------
# Sizing helpers
# --------------------------------------------------------------------------
def _round_up(n, m):
    return -(-n // m) * m


def _padded_tile_bytes(second_minor, minor, dtype):
    """VMEM bytes of a (second_minor, minor) tile after (sublane, 128) padding."""
    itemsize = jnp.dtype(dtype).itemsize
    sublane = 8 * max(1, 4 // itemsize)          # 8 for f32, 16 for bf16, 32 for int8
    return _round_up(second_minor, sublane) * _round_up(minor, 128) * itemsize


def _vmem_capacity_bytes():
    """Physical VMEM per TensorCore; conservative 64 MiB fallback (v7x-class)."""
    try:
        info = pltpu.get_tpu_info()
        cap = getattr(info, "vmem_capacity_bytes", None)
        if cap:
            return int(cap)
    except Exception:
        pass
    return 64 * _MIB


def _vmem_budgets(user_budget_bytes=None):
    """(block-selection budget, vmem_limit_bytes) per TPU generation."""
    cap = _vmem_capacity_bytes()
    if cap <= 64 * _MIB:                 # v7x-class: 64 MiB physical per TC
        limit = max(32 * _MIB, min(cap - 8 * _MIB, 56 * _MIB))
        budget = 40 * _MIB               # tight accounting; can't just crank the limit
    else:                                # v5e / v6e: 128 MiB physical
        limit = min(cap - 24 * _MIB, 104 * _MIB)
        budget = 96 * _MIB               # bigger blocks -> better HBM roofline
    if user_budget_bytes is not None:
        budget = int(user_budget_bytes)
    budget = min(budget, limit - 4 * _MIB)
    return budget, limit


def _const_weight_specs(shapes, grid_rank, single_buffer):
    """BlockSpecs for grid-invariant weights/biases (optionally single-buffered)."""
    idx = (lambda b: (0, 0)) if grid_rank == 1 else (lambda b, s: (0, 0))
    specs = []
    for shp in shapes:
        if single_buffer:
            # Grid-invariant -> the second pipeline buffer is pure VMEM waste.
            specs.append(pl.BlockSpec(shp, idx, pipeline_mode=pl.Buffered(1)))
        else:
            specs.append(pl.BlockSpec(shp, idx))
    return specs


# --------------------------------------------------------------------------
# Fused path: whole (C, HW) slab per sample is resident; grid over batches.
# --------------------------------------------------------------------------
def _fused_se(x3, w1_t, b1_r, w2_t, b2_r, *, channels_last, bt, num_steps,
              vmem_limit, cost, single_buffer_weights):
    if channels_last:
        _, HW, C = x3.shape
        x_block = (bt, HW, C)
        spatial_axis = 1
    else:
        _, C, HW = x3.shape
        x_block = (bt, C, HW)
        spatial_axis = 2
    inv_hw = 1.0 / float(HW)

    def kernel(x_ref, w1_ref, b1_ref, w2_ref, b2_ref, o_ref):
        x = x_ref[...]                                               # native dtype
        # squeeze: f32-accumulating reduce (no full-tile f32 materialization)
        pooled = jnp.sum(x, axis=spatial_axis, dtype=jnp.float32) * inv_hw   # (Bt, C)
        # excitation: Linear -> ReLU -> Linear -> Sigmoid (weights are (in, out))
        h = jnp.dot(pooled, w1_ref[...],
                    preferred_element_type=jnp.float32) + b1_ref[...]
        h = jnp.maximum(h, 0.0)
        s = jnp.dot(h, w2_ref[...],
                    preferred_element_type=jnp.float32) + b2_ref[...]
        s = jax.nn.sigmoid(s).astype(x.dtype)                        # (Bt, C)
        # scale in native dtype
        if channels_last:
            o_ref[...] = x * s[:, None, :]
        else:
            o_ref[...] = x * s[:, :, None]

    x_map = lambda b: (b, 0, 0)
    w_specs = _const_weight_specs(
        [w1_t.shape, b1_r.shape, w2_t.shape, b2_r.shape],
        grid_rank=1, single_buffer=single_buffer_weights)

    return pl.pallas_call(
        kernel,
        out_shape=jax.ShapeDtypeStruct(x3.shape, x3.dtype),
        grid_spec=pltpu.PrefetchScalarGridSpec(
            num_scalar_prefetch=0,
            grid=(num_steps,),
            in_specs=[pl.BlockSpec(x_block, x_map)] + w_specs,
            out_specs=pl.BlockSpec(x_block, x_map),
        ),
        compiler_params=pltpu.CompilerParams(
            dimension_semantics=("parallel",),
            vmem_limit_bytes=vmem_limit,
        ),
        cost_estimate=cost,
    )(x3, w1_t, b1_r, w2_t, b2_r)


# --------------------------------------------------------------------------
# Split path: spatial grid axis (pool-accumulate + excite, then apply).
# Required on v7x for large feature maps that do not fit VMEM per sample.
# --------------------------------------------------------------------------
def _split_se(x3, w1_t, b1_r, w2_t, b2_r, *, channels_last, hw_t, vmem_limit,
              single_buffer_weights):
    if channels_last:
        B, HW, C = x3.shape
        spatial_axis = 1
        x_block = (1, hw_t, C)
        x_map = lambda b, s: (b, s, 0)
    else:
        B, C, HW = x3.shape
        spatial_axis = 2
        x_block = (1, C, hw_t)
        x_map = lambda b, s: (b, 0, s)
    inv_hw = 1.0 / float(HW)
    num_s = pl.cdiv(HW, hw_t)
    needs_mask = (HW % hw_t) != 0

    gate_block = (1, 1, C)                       # (8,128)-compliant gate tiling
    gate_map = lambda b, s: (b, 0, 0)

    # --- phase 1: pooled-sum accumulation across spatial blocks -> gate -----
    def pool_excite_kernel(x_ref, w1_ref, b1_ref, w2_ref, b2_ref, gate_ref):
        s_idx = pl.program_id(1)

        @pl.when(s_idx == 0)
        def _init():
            gate_ref[...] = jnp.zeros_like(gate_ref)

        x = x_ref[...]
        if needs_mask:
            pos = jax.lax.broadcasted_iota(jnp.int32, x.shape, spatial_axis)
            x = jnp.where(pos + s_idx * hw_t < HW, x, jnp.zeros_like(x))
        part = jnp.sum(x, axis=spatial_axis, dtype=jnp.float32)     # (1, C)
        gate_ref[...] += part[:, None, :]                           # (1, 1, C)

        @pl.when(s_idx == pl.num_programs(1) - 1)
        def _finish():
            pooled = gate_ref[...][:, 0, :] * inv_hw                # (1, C)
            h = jnp.dot(pooled, w1_ref[...],
                        preferred_element_type=jnp.float32) + b1_ref[...]
            h = jnp.maximum(h, 0.0)
            g = jnp.dot(h, w2_ref[...],
                        preferred_element_type=jnp.float32) + b2_ref[...]
            gate_ref[...] = jax.nn.sigmoid(g)[:, None, :]

    w_specs = _const_weight_specs(
        [w1_t.shape, b1_r.shape, w2_t.shape, b2_r.shape],
        grid_rank=2, single_buffer=single_buffer_weights)

    gate = pl.pallas_call(
        pool_excite_kernel,
        out_shape=jax.ShapeDtypeStruct((B, 1, C), jnp.float32),
        grid_spec=pltpu.PrefetchScalarGridSpec(
            num_scalar_prefetch=0,
            grid=(B, num_s),
            in_specs=[pl.BlockSpec(x_block, x_map)] + w_specs,
            out_specs=pl.BlockSpec(gate_block, gate_map),
        ),
        compiler_params=pltpu.CompilerParams(
            dimension_semantics=("parallel", "arbitrary"),
            vmem_limit_bytes=vmem_limit,
        ),
    )(x3, w1_t, b1_r, w2_t, b2_r)

    # --- phase 2: apply the channel gate tile-by-tile ------------------------
    def apply_kernel(x_ref, gate_ref, o_ref):
        x = x_ref[...]
        g = gate_ref[...][:, 0, :].astype(x.dtype)                  # (1, C)
        if channels_last:
            o_ref[...] = x * g[:, None, :]
        else:
            o_ref[...] = x * g[:, :, None]

    return pl.pallas_call(
        apply_kernel,
        out_shape=jax.ShapeDtypeStruct(x3.shape, x3.dtype),
        grid_spec=pltpu.PrefetchScalarGridSpec(
            num_scalar_prefetch=0,
            grid=(B, num_s),
            in_specs=[pl.BlockSpec(x_block, x_map),
                      pl.BlockSpec(gate_block, gate_map)],
            out_specs=pl.BlockSpec(x_block, x_map),
        ),
        compiler_params=pltpu.CompilerParams(
            dimension_semantics=("parallel", "parallel"),
            vmem_limit_bytes=vmem_limit,
        ),
    )(x3, gate)


# --------------------------------------------------------------------------
# Public wrapper
# --------------------------------------------------------------------------
def se_layer(x, w1, b1, w2, b2, *, vmem_budget_bytes=None, force_split=False):
    """SELayer forward.

    x : (B, C, H, W) NCHW
    w1: (C//r, C), b1: (C//r,)   -- PyTorch nn.Linear (out, in) layout
    w2: (C, C//r), b2: (C,)
    Returns (B, C, H, W).
    """
    B, C, H, W = x.shape
    Cr = w1.shape[0]
    HW = H * W
    dtype = x.dtype
    itemsize = jnp.dtype(dtype).itemsize

    # Lane-dense layout: only transpose (one extra HBM pass) when it buys
    # unmasked lane-dense stores (C on lanes) that NCHW-flat can't provide.
    channels_last = (C % 128 == 0) and (HW % 128 != 0)
    x3 = x.reshape(B, C, HW)
    if channels_last:
        x3 = jnp.transpose(x3, (0, 2, 1))        # (B, HW, C)

    # Pre-transpose weights to (in, out); biases as (1, n) rows.
    w1_t = jnp.transpose(w1)                     # (C, Cr)
    w2_t = jnp.transpose(w2)                     # (Cr, C)
    b1_r = b1.reshape(1, Cr)
    b2_r = b2.reshape(1, C)

    budget, vmem_limit = _vmem_budgets(vmem_budget_bytes)

    # Honest (padded) VMEM accounting: (sublane, lane)-padded tile bytes.
    if channels_last:
        bytes_per_sample = _padded_tile_bytes(HW, C, dtype)
    else:
        bytes_per_sample = _padded_tile_bytes(C, HW, dtype)
    weight_bytes = 2 * (_padded_tile_bytes(C, Cr, w1_t.dtype)
                        + _padded_tile_bytes(1, Cr, b1_r.dtype)
                        + _padded_tile_bytes(Cr, C, w2_t.dtype)
                        + _padded_tile_bytes(1, C, b2_r.dtype))
    avail = budget - weight_bytes

    # HBM-bound op: roofline is ~2 passes over x; tell XLA so it schedules
    # around the call correctly (MXU shaping of the tiny matmuls is not worth it).
    cost = pl.CostEstimate(
        flops=int(2 * B * C * HW + 4 * B * C * Cr),
        transcendentals=int(B * C),
        bytes_accessed=int(2 * B * C * HW * itemsize
                           + (w1.size + w2.size + b1.size + b2.size) * itemsize),
    )

    # in + out blocks, each double-buffered -> 4x padded per-sample bytes.
    fits_fused = (not force_split) and (avail >= 4 * bytes_per_sample)

    if fits_fused:
        bt_max = avail // (4 * bytes_per_sample)
        bt_cap = int(max(1, min(B, bt_max)))
        # Aim for >= 4 grid steps (>= 2 per TensorCore on v7x; pipeline fill on
        # 1-TC chips too) while keeping each block >= ~2 MiB.
        target_steps = min(4, B)
        bt_for_steps = pl.cdiv(B, target_steps)
        min_block_samples = max(1, pl.cdiv(2 * _MIB, bytes_per_sample))
        bt = int(min(bt_cap, max(bt_for_steps, min_block_samples)))
        num_steps = pl.cdiv(B, bt)
        run = functools.partial(
            _fused_se, x3, w1_t, b1_r, w2_t, b2_r,
            channels_last=channels_last, bt=bt, num_steps=num_steps,
            vmem_limit=vmem_limit, cost=cost)
    else:
        # Spatial-split path: tile HW so blocks fit, targeting ~4 spatial steps.
        if channels_last:
            per_pos_bytes = _round_up(C, 128) * itemsize
            align = 8                            # spatial is the sublane axis
        else:
            per_pos_bytes = _round_up(C, 8) * itemsize
            align = 128                          # spatial is the lane axis
        avail_blk = max(avail, 4 * align * per_pos_bytes)
        fit_t = max(align, (avail_blk // (4 * per_pos_bytes)) // align * align)
        pref_t = _round_up(pl.cdiv(HW, 4), align)
        hw_t = max(align, min(fit_t, pref_t, _round_up(HW, align)))
        run = functools.partial(
            _split_se, x3, w1_t, b1_r, w2_t, b2_r,
            channels_last=channels_last, hw_t=hw_t, vmem_limit=vmem_limit)

    # Grid-invariant weights only need one pipeline buffer; fall back to the
    # default double-buffering if pipeline_mode=pl.Buffered(1) is rejected.
    try:
        out3 = run(single_buffer_weights=True)
    except Exception:
        out3 = run(single_buffer_weights=False)

    if channels_last:
        out3 = jnp.transpose(out3, (0, 2, 1))
    return out3.reshape(B, C, H, W)


def se_layer_ref(x, w1, b1, w2, b2):
    """Pure-JAX reference matching PyTorch SELayer.forward."""
    y = jnp.mean(x, axis=(2, 3))                       # (B, C)
    y = jnp.maximum(y @ w1.T + b1, 0.0)                # (B, C/r)
    y = jax.nn.sigmoid(y @ w2.T + b2)                  # (B, C)
    return x * y[:, :, None, None]


# --------------------------------------------------------------------------
if __name__ == "__main__":
    key = jax.random.PRNGKey(0)

    def make_case(k, B, C, H, W, reduction):
        Cr = max(1, C // reduction)
        kx, k1, k2, k3, k4 = jax.random.split(k, 5)
        x = jax.random.normal(kx, (B, C, H, W), dtype=jnp.float32)
        w1 = jax.random.normal(k1, (Cr, C), dtype=jnp.float32) * 0.1
        b1 = jax.random.normal(k2, (Cr,), dtype=jnp.float32) * 0.1
        w2 = jax.random.normal(k3, (C, Cr), dtype=jnp.float32) * 0.1
        b2 = jax.random.normal(k4, (C,), dtype=jnp.float32) * 0.1
        return x, w1, b1, w2, b2

    cases = [
        # (name,            (B, C, H, W), reduction, force_split)
        ("fused_nchw",      (4, 16, 8, 8),   8, False),
        ("fused_lane_dense", (2, 128, 7, 7), 8, False),  # C%128==0, HW=49 -> channels-last
        ("split_spatial",   (2, 16, 12, 12), 8, True),   # pooled-sum + apply path, masked tail
    ]
    keys = jax.random.split(key, len(cases))
    for (name, (B, C, H, W), red, force), k in zip(cases, keys):
        x, w1, b1, w2, b2 = make_case(k, B, C, H, W, red)
        out = jax.block_until_ready(se_layer(x, w1, b1, w2, b2, force_split=force))
        ref = se_layer_ref(x, w1, b1, w2, b2)
        assert out.shape == x.shape, f"shape mismatch: {name}"
        assert jnp.allclose(out, ref, atol=1e-5, rtol=1e-5), f"mismatch vs reference: {name}"

    print("KERNEL_OK")
</pallas_src>

<mosaic_0001>
module attributes {stable_mosaic.version = 11 : i64} {
  func.func @kernel(%arg0: i32, %arg1: memref<4x16x64xf32, #tpu.memory_space<vmem>>, %arg2: memref<16x2xf32, #tpu.memory_space<vmem>>, %arg3: memref<1x2xf32, #tpu.memory_space<vmem>>, %arg4: memref<2x16xf32, #tpu.memory_space<vmem>>, %arg5: memref<1x16xf32, #tpu.memory_space<vmem>>, %arg6: memref<4x16x64xf32, #tpu.memory_space<vmem>>) attributes {dimension_semantics = [#tpu.dimension_semantics<parallel>], iteration_bounds = array<i64: 1>, scalar_prefetch = 0 : i64, scratch_operands = 0 : i64, tpu.core_type = #tpu.core_type<tc>, window_params = [{transform_indices = @transform_0, window_bounds = array<i64: 4, 16, 64>}, {pipeline_mode = #tpu.pipeline_mode<synchronous>, transform_indices = @transform_1, window_bounds = array<i64: 16, 2>}, {pipeline_mode = #tpu.pipeline_mode<synchronous>, transform_indices = @transform_2, window_bounds = array<i64: 1, 2>}, {pipeline_mode = #tpu.pipeline_mode<synchronous>, transform_indices = @transform_3, window_bounds = array<i64: 2, 16>}, {pipeline_mode = #tpu.pipeline_mode<synchronous>, transform_indices = @transform_4, window_bounds = array<i64: 1, 16>}, {transform_indices = @transform_5, window_bounds = array<i64: 4, 16, 64>}]} {
    %c0 = arith.constant 0 : index
    %c0_0 = arith.constant 0 : index
    %c0_1 = arith.constant 0 : index
    %0 = vector.load %arg1[%c0, %c0_0, %c0_1] : memref<4x16x64xf32, #tpu.memory_space<vmem>>, vector<4x16x64xf32>
    %cst = arith.constant dense<0.000000e+00> : vector<4x16xf32>
    %1 = vector.multi_reduction <add>, %0, %cst [2] : vector<4x16x64xf32> to vector<4x16xf32>
    %cst_2 = arith.constant 1.562500e-02 : f32
    %2 = vector.broadcast %cst_2 : f32 to vector<4x16xf32>
    %3 = arith.mulf %1, %2 : vector<4x16xf32>
    %c0_3 = arith.constant 0 : index
    %c0_4 = arith.constant 0 : index
    %4 = vector.load %arg2[%c0_3, %c0_4] : memref<16x2xf32, #tpu.memory_space<vmem>>, vector<16x2xf32>
    %cst_5 = arith.constant dense<0.000000e+00> : vector<4x2xf32>
    %5 = tpu.matmul %3, %4, %cst_5 {dimension_numbers = #tpu.dot_dimension_numbers<[1], [0], [0], [1], [0, 0, 1, 1], [], []>} : vector<4x16xf32>, vector<16x2xf32>, vector<4x2xf32> -> vector<4x2xf32>
    %c0_6 = arith.constant 0 : index
    %c0_7 = arith.constant 0 : index
    %6 = vector.load %arg3[%c0_6, %c0_7] : memref<1x2xf32, #tpu.memory_space<vmem>>, vector<1x2xf32>
    %7 = vector.broadcast %6 : vector<1x2xf32> to vector<4x2xf32>
    %8 = arith.addf %5, %7 : vector<4x2xf32>
    %cst_8 = arith.constant 0.000000e+00 : f32
    %9 = vector.broadcast %cst_8 : f32 to vector<4x2xf32>
    %10 = arith.maximumf %8, %9 : vector<4x2xf32>
    %c0_9 = arith.constant 0 : index
    %c0_10 = arith.constant 0 : index
    %11 = vector.load %arg4[%c0_9, %c0_10] : memref<2x16xf32, #tpu.memory_space<vmem>>, vector<2x16xf32>
    %cst_11 = arith.constant dense<0.000000e+00> : vector<4x16xf32>
    %12 = tpu.matmul %10, %11, %cst_11 {dimension_numbers = #tpu.dot_dimension_numbers<[1], [0], [0], [1], [0, 0, 1, 1], [], []>} : vector<4x2xf32>, vector<2x16xf32>, vector<4x16xf32> -> vector<4x16xf32>
    %c0_12 = arith.constant 0 : index
    %c0_13 = arith.constant 0 : index
    %13 = vector.load %arg5[%c0_12, %c0_13] : memref<1x16xf32, #tpu.memory_space<vmem>>, vector<1x16xf32>
    %14 = vector.broadcast %13 : vector<1x16xf32> to vector<4x16xf32>
    %15 = arith.addf %12, %14 : vector<4x16xf32>
    %16 = arith.negf %15 : vector<4x16xf32>
    %17 = math.exp %16 : vector<4x16xf32>
    %cst_14 = arith.constant 1.000000e+00 : f32
    %18 = vector.broadcast %cst_14 : f32 to vector<4x16xf32>
    %19 = arith.addf %18, %17 : vector<4x16xf32>
    %20 = arith.divf %18, %19 : vector<4x16xf32>
    %21 = vector.shape_cast %20 : vector<4x16xf32> to vector<4x16x1xf32>
    %22 = vector.broadcast %21 : vector<4x16x1xf32> to vector<4x16x64xf32>
    %23 = arith.mulf %0, %22 : vector<4x16x64xf32>
    %c0_15 = arith.constant 0 : index
    %c0_16 = arith.constant 0 : index
    %c0_17 = arith.constant 0 : index
    %24 = vector.load %arg6[%c0_15, %c0_16, %c0_17] : memref<4x16x64xf32, #tpu.memory_space<vmem>>, vector<4x16x64xf32>
    tpu.vector_store %arg6[%c0_15, %c0_16, %c0_17], %23 {strides = array<i32>} : memref<4x16x64xf32, #tpu.memory_space<vmem>>, vector<4x16x64xf32>,
    return
  }
  func.func @transform_0(%arg0: i32) -> (i32, i32, i32) {
    %c0_i32 = arith.constant 0 : i32
    %c0_i32_0 = arith.constant 0 : i32
    %c0_i32_1 = arith.constant 0 : i32
    return %arg0, %c0_i32, %c0_i32_0 : i32, i32, i32
  }
  func.func @transform_1(%arg0: i32) -> (i32, i32) {
    %c0_i32 = arith.constant 0 : i32
    %c0_i32_0 = arith.constant 0 : i32
    %c0_i32_1 = arith.constant 0 : i32
    return %c0_i32, %c0_i32_0 : i32, i32
  }
  func.func @transform_2(%arg0: i32) -> (i32, i32) {
    %c0_i32 = arith.constant 0 : i32
    %c0_i32_0 = arith.constant 0 : i32
    %c0_i32_1 = arith.constant 0 : i32
    return %c0_i32, %c0_i32_0 : i32, i32
  }
  func.func @transform_3(%arg0: i32) -> (i32, i32) {
    %c0_i32 = arith.constant 0 : i32
    %c0_i32_0 = arith.constant 0 : i32
    %c0_i32_1 = arith.constant 0 : i32
    return %c0_i32, %c0_i32_0 : i32, i32
  }
  func.func @transform_4(%arg0: i32) -> (i32, i32) {
    %c0_i32 = arith.constant 0 : i32
    %c0_i32_0 = arith.constant 0 : i32
    %c0_i32_1 = arith.constant 0 : i32
    return %c0_i32, %c0_i32_0 : i32, i32
  }
  func.func @transform_5(%arg0: i32) -> (i32, i32, i32) {
    %c0_i32 = arith.constant 0 : i32
    %c0_i32_0 = arith.constant 0 : i32
    %c0_i32_1 = arith.constant 0 : i32
    return %arg0, %c0_i32, %c0_i32_0 : i32, i32, i32
  }
}

module attributes {stable_mosaic.version = 11 : i64} {
  func.func @kernel(%arg0: i32, %arg1: memref<4x16x64xf32, #tpu.memory_space<vmem>>, %arg2: memref<16x2xf32, #tpu.memory_space<vmem>>, %arg3: memref<1x2xf32, #tpu.memory_space<vmem>>, %arg4: memref<2x16xf32, #tpu.memory_space<vmem>>, %arg5: memref<1x16xf32, #tpu.memory_space<vmem>>, %arg6: memref<4x16x64xf32, #tpu.memory_space<vmem>>) attributes {dimension_semantics = [#tpu.dimension_semantics<parallel>], iteration_bounds = array<i64: 1>, scalar_prefetch = 0 : i64, scratch_operands = 0 : i64, tpu.core_type = #tpu.core_type<tc>, window_params = [{transform_indices = @transform_0, window_bounds = array<i64: 4, 16, 64>}, {pipeline_mode = #tpu.pipeline_mode<synchronous>, transform_indices = @transform_1, window_bounds = array<i64: 16, 2>}, {pipeline_mode = #tpu.pipeline_mode<synchronous>, transform_indices = @transform_2, window_bounds = array<i64: 1, 2>}, {pipeline_mode = #tpu.pipeline_mode<synchronous>, transform_indices = @transform_3, window_bounds = array<i64: 2, 16>}, {pipeline_mode = #tpu.pipeline_mode<synchronous>, transform_indices = @transform_4, window_bounds = array<i64: 1, 16>}, {transform_indices = @transform_5, window_bounds = array<i64: 4, 16, 64>}]} {
    %c0 = arith.constant 0 : index
    %c0_0 = arith.constant 0 : index
    %c0_1 = arith.constant 0 : index
    %0 = vector.load %arg1[%c0, %c0_0, %c0_1] : memref<4x16x64xf32, #tpu.memory_space<vmem>>, vector<4x16x64xf32>
    %cst = arith.constant dense<0.000000e+00> : vector<4x16xf32>
    %1 = vector.multi_reduction <add>, %0, %cst [2] : vector<4x16x64xf32> to vector<4x16xf32>
    %cst_2 = arith.constant 1.562500e-02 : f32
    %2 = vector.broadcast %cst_2 : f32 to vector<4x16xf32>
    %3 = arith.mulf %1, %2 : vector<4x16xf32>
    %c0_3 = arith.constant 0 : index
    %c0_4 = arith.constant 0 : index
    %4 = vector.load %arg2[%c0_3, %c0_4] : memref<16x2xf32, #tpu.memory_space<vmem>>, vector<16x2xf32>
    %cst_5 = arith.constant dense<0.000000e+00> : vector<4x2xf32>
    %5 = tpu.matmul %3, %4, %cst_5 {dimension_numbers = #tpu.dot_dimension_numbers<[1], [0], [0], [1], [0, 0, 1, 1], [], []>} : vector<4x16xf32>, vector<16x2xf32>, vector<4x2xf32> -> vector<4x2xf32>
    %c0_6 = arith.constant 0 : index
    %c0_7 = arith.constant 0 : index
    %6 = vector.load %arg3[%c0_6, %c0_7] : memref<1x2xf32, #tpu.memory_space<vmem>>, vector<1x2xf32>
    %7 = vector.broadcast %6 : vector<1x2xf32> to vector<4x2xf32>
    %8 = arith.addf %5, %7 : vector<4x2xf32>
    %cst_8 = arith.constant 0.000000e+00 : f32
    %9 = vector.broadcast %cst_8 : f32 to vector<4x2xf32>
    %10 = arith.maximumf %8, %9 : vector<4x2xf32>
    %c0_9 = arith.constant 0 : index
    %c0_10 = arith.constant 0 : index
    %11 = vector.load %arg4[%c0_9, %c0_10] : memref<2x16xf32, #tpu.memory_space<vmem>>, vector<2x16xf32>
    %cst_11 = arith.constant dense<0.000000e+00> : vector<4x16xf32>
    %12 = tpu.matmul %10, %11, %cst_11 {dimension_numbers = #tpu.dot_dimension_numbers<[1], [0], [0], [1], [0, 0, 1, 1], [], []>} : vector<4x2xf32>, vector<2x16xf32>, vector<4x16xf32> -> vector<4x16xf32>
    %c0_12 = arith.constant 0 : index
    %c0_13 = arith.constant 0 : index
    %13 = vector.load %arg5[%c0_12, %c0_13] : memref<1x16xf32, #tpu.memory_space<vmem>>, vector<1x16xf32>
    %14 = vector.broadcast %13 : vector<1x16xf32> to vector<4x16xf32>
    %15 = arith.addf %12, %14 : vector<4x16xf32>
    %16 = arith.negf %15 : vector<4x16xf32>
    %17 = math.exp %16 : vector<4x16xf32>
    %cst_14 = arith.constant 1.000000e+00 : f32
    %18 = vector.broadcast %cst_14 : f32 to vector<4x16xf32>
    %19 = arith.addf %18, %17 : vector<4x16xf32>
    %20 = arith.divf %18, %19 : vector<4x16xf32>
    %21 = vector.shape_cast %20 : vector<4x16xf32> to vector<4x16x1xf32>
    %22 = vector.broadcast %21 : vector<4x16x1xf32> to vector<4x16x64xf32>
    %23 = arith.mulf %0, %22 : vector<4x16x64xf32>
    %c0_15 = arith.constant 0 : index
    %c0_16 = arith.constant 0 : index
    %c0_17 = arith.constant 0 : index
    %24 = vector.load %arg6[%c0_15, %c0_16, %c0_17] : memref<4x16x64xf32, #tpu.memory_space<vmem>>, vector<4x16x64xf32>
    tpu.vector_store %arg6[%c0_15, %c0_16, %c0_17], %23 {strides = array<i32>} : memref<4x16x64xf32, #tpu.memory_space<vmem>>, vector<4x16x64xf32>,
    return
  }
  func.func @transform_0(%arg0: i32) -> (i32, i32, i32) {
    %c0_i32 = arith.constant 0 : i32
    %c0_i32_0 = arith.constant 0 : i32
    %c0_i32_1 = arith.constant 0 : i32
    return %arg0, %c0_i32, %c0_i32_0 : i32, i32, i32
  }
  func.func @transform_1(%arg0: i32) -> (i32, i32) {
    %c0_i32 = arith.constant 0 : i32
    %c0_i32_0 = arith.constant 0 : i32
    %c0_i32_1 = arith.constant 0 : i32
    return %c0_i32, %c0_i32_0 : i32, i32
  }
  func.func @transform_2(%arg0: i32) -> (i32, i32) {
    %c0_i32 = arith.constant 0 : i32
    %c0_i32_0 = arith.constant 0 : i32
    %c0_i32_1 = arith.constant 0 : i32
    return %c0_i32, %c0_i32_0 : i32, i32
  }
  func.func @transform_3(%arg0: i32) -> (i32, i32) {
    %c0_i32 = arith.constant 0 : i32
    %c0_i32_0 = arith.constant 0 : i32
    %c0_i32_1 = arith.constant 0 : i32
    return %c0_i32, %c0_i32_0 : i32, i32
  }
  func.func @transform_4(%arg0: i32) -> (i32, i32) {
    %c0_i32 = arith.constant 0 : i32
    %c0_i32_0 = arith.constant 0 : i32
    %c0_i32_1 = arith.constant 0 : i32
    return %c0_i32, %c0_i32_0 : i32, i32
  }
  func.func @transform_5(%arg0: i32) -> (i32, i32, i32) {
    %c0_i32 = arith.constant 0 : i32
    %c0_i32_0 = arith.constant 0 : i32
    %c0_i32_1 = arith.constant 0 : i32
    return %arg0, %c0_i32, %c0_i32_0 : i32, i32, i32
  }
}

</mosaic_0001>

<bundles_post_ra>
// kernel: tpu_custom_call.1
= control target key start
LH: loop header
LB: loop body
LE: loop exit
PB: predicated region body
PF: predicated region fallthrough
CT: control target
= control target key end

     0   :  { %10 = vsyncpa [#allocation3], 0  ;;  %s609_s0 = inlined_call_operand.hbm [shape: f32[4,16,64], index: 0, kind: input, shape index: {}]   ;;  %s610_s1 = inlined_call_operand.vmem [shape: f32[16,2], index: 1, kind: input, shape index: {}]   ;;  %s611_s2 = inlined_call_operand.vmem [shape: f32[1,2], index: 2, kind: input, shape index: {}]   ;;  %s612_s3 = inlined_call_operand.vmem [shape: f32[2,16], index: 3, kind: input, shape index: {}]   ;;  %s613_s4 = inlined_call_operand.vmem [shape: f32[1,16], index: 4, kind: input, shape index: {}]   ;;  %s614_s5 = inlined_call_operand.hbm [shape: f32[4,16,64], index: 5, kind: output, shape index: {}]  }
   0x1   :  { %11 = vsyncpa [#allocation4], 0  ;;  %s467_s18 = smov [#allocation2]   ;;  %s419_s22 = scalar_lea.hbm %s609_s0, 1024 }
   0x2   :  { %s17_s19 = sshll.u32 %s467_s18, 4  ;;  %p420_p0 = scmp.ne.s32.totalorder %s609_s0, %s419_s22  ;;  %s18_s19 = int_to_ptr.vmem [resolvable:$true] %s17_s19 }
   0x3   :  { %p423_p1 = scmp.lt.u32.totalorder %s419_s22, %s609_s0 }
   0x5   :  { %p425_p2 = pnand %p423_p1, %p420_p0 }
   0x7   :  { %428 = shalt.err (!%p425_p2)
}
   0x8   :  { %s429_s27 = scalar_lea.vmem %s18_s19, 1024  ;;  %p434_p4 = scmp.lt.s32.totalorder %s18_s19, %s18_s19 }
   0x9   :  { %p430_p3 = scmp.ne.s32.totalorder %s18_s19, %s429_s27  ;;  %p435_p5 = scmp.lt.s32.totalorder %s429_s27, %s429_s27 }
   0xb   :  { %p436_p6 = por %p435_p5, %p434_p4 }
   0xd   :  { %p437_p7 = pnand %p436_p6, %p430_p3 }
   0xf   :  { %440 = shalt.err (!%p437_p7)
}
  0x10   :  { %s468_s28 = smov 128   ;;  %s469_s29 = smov 8  }
  0x11   :  { %23 = dma.hbm_to_vmem [thread:$0]  %s609_s0, 1024, %s18_s19, [#allocation3], %s468_s28, %s468_s28, %s469_s29  }
  0x12   :  { %463 = dma.done.wait [#allocation3], 1024  }
  0x13   :  { %464 = vsyncadd [#allocation3], 4294966272  ;;  %vm43_vm0 = vcmask 523264   ;;  %v519_v0 = vld [vmem:[#allocation2 + $0x10] sm:$0xff]  ;;  %v521_v1 = vld [vmem:[#allocation2] sm:$0xff]  ;;  %v470_v19 = vmov 0.0|0.0   ;;  %v93_v21 = vlaneseq }
  0x14   :  { %v523_v2 = vld [vmem:[#allocation2 + $0x18] sm:$0xff]  ;;  %v50_v3 = vsel %vm43_vm0, %v519_v0, 0.0  ;;  %v44_v4 = vsel %vm43_vm0, %v521_v1, 0.0  ;;  %v529_v5 = vld [vmem:[#allocation2 + $0x8] sm:$0xff]  ;;  %v537_v9 = vld [vmem:[#allocation2 + $0x20] sm:$0xff]  ;;  %405 = vmatprep.subr.bf16.mxu0 %v470_v19  ;;  %vm471_vm1 = vmmov 0  }
  0x15   :  { %51 = vadd.xlane.f32.xlu1 %v50_v3  ;;  %45 = vadd.xlane.f32.xlu0 %v44_v4  ;;  %v53_v6 = vsel %vm43_vm0, %v523_v2, 0.0  ;;  %v47_v7 = vsel %vm43_vm0, %v529_v5, 0.0  ;;  %v535_v8 = vld [vmem:[#allocation2 + $0x28] sm:$0xff]  ;;  %v56_v11 = vsel %vm43_vm0, %v537_v9, 0.0  ;;  %v543_v12 = vld [vmem:[#allocation2 + $0x38] sm:$0xff]  ;;  %v545_v13 = vld [vmem:[#allocation2 + $0x30] sm:$0xff] }
  0x16   :  { %v59_v10 = vsel %vm43_vm0, %v535_v8, 0.0  ;;  %v65_v14 = vsel %vm43_vm0, %v543_v12, 0.0  ;;  %v62_v15 = vsel %vm43_vm0, %v545_v13, 0.0  ;;  %v76_v16 = vld [vmem:[%s610_s1] sm:$0xff]  ;;  %v77_v17 = vld [vmem:[%s610_s1 + $0x8] sm:$0xff]  ;;  %v472_v20 = vmov 0.0  }
  0x17   :  { %v406_v18 = vpack.c.bf16 %v77_v17, %v76_v16  ;;  %397 = vmatprep.mubr.msk.f32.mxu0 %vm471_vm1, %v472_v20  ;;  %400 = vmatprep.subr.mxu1 %v472_v20  ;;  %v94_v22 = vand.u32 127, %v93_v21  ;;  %v557_v26 = vshrl.u32 %v93_v21, 7  ;;  %vm104_vm2 = vcmask 130112   ;;  %v213_v58 = vld [vmem:[%s612_s3] sm:$0x3] }
  0x18   :  { %402 = vmatprep.mubr.msk.f32.mxu1 %vm471_vm1, %v472_v20  ;;  %vm133_vm3 = vcmask 1041409   ;;  %vm135_vm4 = vcmask 1042434   ;;  %vm137_vm5 = vcmask 1043459   ;;  %vm139_vm6 = vcmask 130048   ;;  %v382_v59 = vld [vmem:[%s611_s2] ss:$0 sm:$0xff] }
  0x19   :  { %54 = vadd.xlane.f32.xlu1 %v53_v6  ;;  %48 = vadd.xlane.f32.xlu0 %v47_v7  ;;  %v99_v25 = vadd.s32 4294967288, %v94_v22  ;;  %v97_v32 = vsub.s32 %v94_v22, %v557_v26  ;;  %vm225_vm7 = vcmask 1041408   ;;  %vm221_vm8 = vcmask 15360   ;;  %v384_v3 = vld [vmem:[%s613_s4] ss:$0 sm:$0xff]  ;;  %s473_s2 = smov [#allocation5]  }
  0x1a   :  { %407 = vmatpush3.bf16.msra.mxu0 %v406_v18  ;;  %401 = vmatpush3.msk.msra.mxu1 %vm225_vm7, %v213_v58  ;;  %v318_v18 = vsub.s32 1, %v557_v26  ;;  %v329_v19 = vsub.s32 2, %v557_v26  ;;  %v340_v22 = vsub.s32 3, %v557_v26  ;;  %s370_s3 = sshll.u32 %s473_s2, 4  ;;  %s371_s3 = int_to_ptr.vmem [resolvable:$true] %s370_s3 }
  0x1b   :  { %v102_v29 = vsub.s32 %v99_v25, %v557_v26  ;;  %s441_s4 = scalar_lea.vmem %s371_s3, 1024  ;;  %p446_p9 = scmp.lt.s32.totalorder %s371_s3, %s371_s3 }
  0x1c   :  { %p442_p8 = scmp.ne.s32.totalorder %s371_s3, %s441_s4  ;;  %p447_p10 = scmp.lt.s32.totalorder %s441_s4, %s441_s4 }
  0x1d   :  { %60 = vadd.xlane.f32.xlu1 %v59_v10  ;;  %57 = vadd.xlane.f32.xlu0 %v56_v11 }
  0x1e   :  { %p448_p11 = por %p447_p10, %p446_p9 }
  0x20   :  { %p449_p12 = pnand %p448_p11, %p442_p8 }
  0x21   :  { %66 = vadd.xlane.f32.xlu1 %v65_v14  ;;  %63 = vadd.xlane.f32.xlu0 %v62_v15  ;;  %v307_v15 = vsub.s32 0, %v557_v26 }
  0xa2   :  { %v52_v23 = vpop.xlane.xlu1 %51  ;;  %v46_v24 = vpop.xlane.xlu0 %45 }
  0xa3   :  { %v70_v33 = vmul.f32 0.015625, %v52_v23  ;;  %v68_v34 = vmul.f32 0.015625, %v46_v24 }
  0xa5   :  { %v109_v41 = vrot.slane %v70_v33, %v97_v32  ;;  %v98_v42 = vrot.slane %v68_v34, %v97_v32 }
  0xa6   :  { %v55_v27 = vpop.xlane.xlu1 %54  ;;  %v49_v28 = vpop.xlane.xlu0 %48 }
  0xa7   :  { %v71_v30 = vmul.f32 0.015625, %v55_v27  ;;  %v69_v31 = vmul.f32 0.015625, %v49_v28 }
  0xa9   :  { %v113_v37 = vrot.slane %v71_v30, %v102_v29  ;;  %v103_v38 = vrot.slane %v69_v31, %v102_v29 }
  0xaa   :  { %v61_v35 = vpop.xlane.xlu1 %60  ;;  %v58_v36 = vpop.xlane.xlu0 %57 }
  0xab   :  { %v73_v39 = vmul.f32 0.015625, %v61_v35  ;;  %v72_v40 = vmul.f32 0.015625, %v58_v36  ;;  %v114_v47 = vsel %vm104_vm2, %v113_v37, %v109_v41  ;;  %v105_v48 = vsel %vm104_vm2, %v103_v38, %v98_v42 }
  0xac   :  { %v134_v54 = vsel %vm133_vm3, %v114_v47, %v105_v48 }
  0xad   :  { %v122_v43 = vrot.slane %v73_v39, %v102_v29  ;;  %v118_v44 = vrot.slane %v72_v40, %v97_v32 }
  0xae   :  { %v67_v45 = vpop.xlane.xlu1 %66  ;;  %v64_v46 = vpop.xlane.xlu0 %63 }
  0xaf   :  { %v75_v49 = vmul.f32 0.015625, %v67_v45  ;;  %v74_v50 = vmul.f32 0.015625, %v64_v46  ;;  %v123_v51 = vsel %vm104_vm2, %v122_v43, %v118_v44 }
  0xb0   :  { %v136_v56 = vsel %vm135_vm4, %v123_v51, %v134_v54 }
  0xb1   :  { %v131_v52 = vrot.slane %v75_v49, %v102_v29  ;;  %v127_v53 = vrot.slane %v74_v50, %v97_v32 }
  0xb3   :  { %v132_v55 = vsel %vm104_vm2, %v131_v52, %v127_v53 }
  0xb4   :  { %v138_v57 = vsel %vm137_vm5, %v132_v55, %v136_v56 }
  0xb5   :  { %398 = vmatmul.mubr.msk.f32.vlgmr.msra.gmra.mrb[0].mxu0 %vm139_vm6, %v138_v57 }
 0x188   :  { %v208_v60 = vpop.f32.mrb[0].mxu0 }
 0x189   :  { %v209_v61 = vadd.f32 %v382_v59, %v208_v60  ;;  %v399_v62 = vpop.f32.mrb[1].mxu0 }
 0x18b   :  { %v212_v63 = vmax.f32 %v209_v61, 0.0 }
 0x18d   :  { %403 = vmatmul.mubr.msk.f32.vlgmr.msra.gmra.mrb[0].mxu1 %vm221_vm8, %v212_v63 }
 0x260   :  { %v295_v4 = vpop.f32.mrb[0].mxu1 }
 0x261   :  { %v296_v6 = vadd.f32 %v384_v3, %v295_v4  ;;  %v404_v7 = vpop.f32.mrb[1].mxu1 }
 0x263   :  { %v387_v10 = vmul.f32 -1.442695, %v296_v6 }
 0x265   :  { %415 = vpow2.f32 %v387_v10 }
 0x26f   :  { %v416_v11 = vpop.eup %415 }
 0x270   :  { %v302_v14 = vadd.f32 1.0, %v416_v11 }
 0x272   :  { %417 = vrcp.f32 %v302_v14 }
 0x27c   :  { %v418_v16 = vpop.eup %417 }
 0x27d   :  { %v308_v17 = vrot.slane %v418_v16, %v307_v15  ;;  %v319_v20 = vrot.slane %v418_v16, %v318_v18  ;;  %v330_v21 = vrot.slane %v418_v16, %v329_v19  ;;  %v341_v23 = vrot.slane %v418_v16, %v340_v22 }
 0x27f   :  { %314 = vbcast.lane.b32.xlu1 %v308_v17, 264  ;;  %310 = vbcast.lane.b32.xlu0 %v308_v17, 256 }
 0x283   :  { %321 = vbcast.lane.b32.xlu1 %v319_v20, 256  ;;  %332 = vbcast.lane.b32.xlu0 %v330_v21, 256 }
 0x287   :  { %325 = vbcast.lane.b32.xlu1 %v319_v20, 264  ;;  %343 = vbcast.lane.b32.xlu0 %v341_v23, 256 }
 0x28b   :  { %336 = vbcast.lane.b32.xlu1 %v330_v21, 264 }
 0x28f   :  { %347 = vbcast.lane.b32.xlu1 %v341_v23, 264 }
 0x2f1   :  { %v315_v24 = vpop.permute.xlu1 %314  ;;  %v311_v25 = vpop.permute.xlu0 %310 }
 0x2f2   :  { %v350_v27 = vmul.f32 %v315_v24, %v529_v5  ;;  %v349_v28 = vmul.f32 %v311_v25, %v521_v1 }
 0x2f4   :  { %358 = vst.msk [vmem:[#allocation5 + $0x8] sm:$0xff] %vm43_vm0, %v350_v27  ;;  %357 = vst.msk [vmem:[#allocation5] sm:$0xff] %vm43_vm0, %v349_v28 }
 0x2f5   :  { %v322_v29 = vpop.permute.xlu1 %321  ;;  %v333_v30 = vpop.permute.xlu0 %332 }
 0x2f6   :  { %v351_v26 = vmul.f32 %v322_v29, %v519_v0  ;;  %v353_v31 = vmul.f32 %v333_v30, %v537_v9 }
 0x2f8   :  { %359 = vst.msk [vmem:[#allocation5 + $0x10] sm:$0xff] %vm43_vm0, %v351_v26  ;;  %361 = vst.msk [vmem:[#allocation5 + $0x20] sm:$0xff] %vm43_vm0, %v353_v31 }
 0x2f9   :  { %v326_v32 = vpop.permute.xlu1 %325  ;;  %v344_v33 = vpop.permute.xlu0 %343 }
 0x2fa   :  { %v352_v5 = vmul.f32 %v326_v32, %v523_v2  ;;  %v355_v1 = vmul.f32 %v344_v33, %v545_v13 }
 0x2fc   :  { %360 = vst.msk [vmem:[#allocation5 + $0x18] sm:$0xff] %vm43_vm0, %v352_v5  ;;  %363 = vst.msk [vmem:[#allocation5 + $0x30] sm:$0xff] %vm43_vm0, %v355_v1 }
 0x2fd   :  { %v337_v34 = vpop.permute.xlu1 %336 }
 0x2fe   :  { %v354_v35 = vmul.f32 %v337_v34, %v535_v8 }
 0x300   :  { %362 = vst.msk [vmem:[#allocation5 + $0x28] sm:$0xff] %vm43_vm0, %v354_v35 }
 0x301   :  { %v348_v0 = vpop.permute.xlu1 %347 }
 0x302   :  { %v356_v9 = vmul.f32 %v348_v0, %v543_v12 }
 0x304   :  { %364 = vst.msk [vmem:[#allocation5 + $0x38] sm:$0xff] %vm43_vm0, %v356_v9 }
 0x305   :  { %452 = shalt.err (!%p449_p12)
}
 0x306   :  { %s453_s17 = scalar_lea.hbm %s614_s5, 1024 }
 0x307   :  { %p454_p13 = scmp.ne.s32.totalorder %s614_s5, %s453_s17  ;;  %p457_p0 = scmp.lt.u32.totalorder %s453_s17, %s614_s5 }
 0x309   :  { %p459_p1 = pnand %p457_p0, %p454_p13 }
 0x30b   :  { %462 = shalt.err (!%p459_p1)
}
 0x30c   :  { %376 = dma.vmem_to_hbm [thread:$0]  %s371_s3, 1024, %s614_s5, [#allocation4], %s468_s28, %s468_s28, %s469_s29  }
 0x30d   :  { %465 = dma.done.wait [#allocation4], 1024  }
 0x30e   :  { %466 = vsyncadd [#allocation4], 4294966272 }
 0x30f   :  { %380 = vsyncpa [#allocation3], 1 }
 0x310   :  { %381 = vsyncpa [#allocation4], 1 }

// kernel: tpu_custom_call.1
= control target key start
LH: loop header
LB: loop body
LE: loop exit
PB: predicated region body
PF: predicated region fallthrough
CT: control target
= control target key end

     0   :  { %10 = vsyncpa [#allocation3], 0  ;;  %s609_s0 = inlined_call_operand.hbm [shape: f32[4,16,64], index: 0, kind: input, shape index: {}]   ;;  %s610_s1 = inlined_call_operand.vmem [shape: f32[16,2], index: 1, kind: input, shape index: {}]   ;;  %s611_s2 = inlined_call_operand.vmem [shape: f32[1,2], index: 2, kind: input, shape index: {}]   ;;  %s612_s3 = inlined_call_operand.vmem [shape: f32[2,16], index: 3, kind: input, shape index: {}]   ;;  %s613_s4 = inlined_call_operand.vmem [shape: f32[1,16], index: 4, kind: input, shape index: {}]   ;;  %s614_s5 = inlined_call_operand.hbm [shape: f32[4,16,64], index: 5, kind: output, shape index: {}]  }
   0x1   :  { %11 = vsyncpa [#allocation4], 0  ;;  %s467_s18 = smov [#allocation2]   ;;  %s419_s22 = scalar_lea.hbm %s609_s0, 1024 }
   0x2   :  { %s17_s19 = sshll.u32 %s467_s18, 4  ;;  %p420_p0 = scmp.ne.s32.totalorder %s609_s0, %s419_s22  ;;  %s18_s19 = int_to_ptr.vmem [resolvable:$true] %s17_s19 }
   0x3   :  { %p423_p1 = scmp.lt.u32.totalorder %s419_s22, %s609_s0 }
   0x5   :  { %p425_p2 = pnand %p423_p1, %p420_p0 }
   0x7   :  { %428 = shalt.err (!%p425_p2)
}
   0x8   :  { %s429_s27 = scalar_lea.vmem %s18_s19, 1024  ;;  %p434_p4 = scmp.lt.s32.totalorder %s18_s19, %s18_s19 }
   0x9   :  { %p430_p3 = scmp.ne.s32.totalorder %s18_s19, %s429_s27  ;;  %p435_p5 = scmp.lt.s32.totalorder %s429_s27, %s429_s27 }
   0xb   :  { %p436_p6 = por %p435_p5, %p434_p4 }
   0xd   :  { %p437_p7 = pnand %p436_p6, %p430_p3 }
   0xf   :  { %440 = shalt.err (!%p437_p7)
}
  0x10   :  { %s468_s28 = smov 128   ;;  %s469_s29 = smov 8  }
  0x11   :  { %23 = dma.hbm_to_vmem [thread:$0]  %s609_s0, 1024, %s18_s19, [#allocation3], %s468_s28, %s468_s28, %s469_s29  }
  0x12   :  { %463 = dma.done.wait [#allocation3], 1024  }
  0x13   :  { %464 = vsyncadd [#allocation3], 4294966272  ;;  %vm43_vm0 = vcmask 523264   ;;  %v519_v0 = vld [vmem:[#allocation2 + $0x10] sm:$0xff]  ;;  %v521_v1 = vld [vmem:[#allocation2] sm:$0xff]  ;;  %v470_v19 = vmov 0.0|0.0   ;;  %v93_v21 = vlaneseq }
  0x14   :  { %v523_v2 = vld [vmem:[#allocation2 + $0x18] sm:$0xff]  ;;  %v50_v3 = vsel %vm43_vm0, %v519_v0, 0.0  ;;  %v44_v4 = vsel %vm43_vm0, %v521_v1, 0.0  ;;  %v529_v5 = vld [vmem:[#allocation2 + $0x8] sm:$0xff]  ;;  %v537_v9 = vld [vmem:[#allocation2 + $0x20] sm:$0xff]  ;;  %405 = vmatprep.subr.bf16.mxu0 %v470_v19  ;;  %vm471_vm1 = vmmov 0  }
  0x15   :  { %51 = vadd.xlane.f32.xlu1 %v50_v3  ;;  %45 = vadd.xlane.f32.xlu0 %v44_v4  ;;  %v53_v6 = vsel %vm43_vm0, %v523_v2, 0.0  ;;  %v47_v7 = vsel %vm43_vm0, %v529_v5, 0.0  ;;  %v535_v8 = vld [vmem:[#allocation2 + $0x28] sm:$0xff]  ;;  %v56_v11 = vsel %vm43_vm0, %v537_v9, 0.0  ;;  %v543_v12 = vld [vmem:[#allocation2 + $0x38] sm:$0xff]  ;;  %v545_v13 = vld [vmem:[#allocation2 + $0x30] sm:$0xff] }
  0x16   :  { %v59_v10 = vsel %vm43_vm0, %v535_v8, 0.0  ;;  %v65_v14 = vsel %vm43_vm0, %v543_v12, 0.0  ;;  %v62_v15 = vsel %vm43_vm0, %v545_v13, 0.0  ;;  %v76_v16 = vld [vmem:[%s610_s1] sm:$0xff]  ;;  %v77_v17 = vld [vmem:[%s610_s1 + $0x8] sm:$0xff]  ;;  %v472_v20 = vmov 0.0  }
  0x17   :  { %v406_v18 = vpack.c.bf16 %v77_v17, %v76_v16  ;;  %397 = vmatprep.mubr.msk.f32.mxu0 %vm471_vm1, %v472_v20  ;;  %400 = vmatprep.subr.mxu1 %v472_v20  ;;  %v94_v22 = vand.u32 127, %v93_v21  ;;  %v557_v26 = vshrl.u32 %v93_v21, 7  ;;  %vm104_vm2 = vcmask 130112   ;;  %v213_v58 = vld [vmem:[%s612_s3] sm:$0x3] }
  0x18   :  { %402 = vmatprep.mubr.msk.f32.mxu1 %vm471_vm1, %v472_v20  ;;  %vm133_vm3 = vcmask 1041409   ;;  %vm135_vm4 = vcmask 1042434   ;;  %vm137_vm5 = vcmask 1043459   ;;  %vm139_vm6 = vcmask 130048   ;;  %v382_v59 = vld [vmem:[%s611_s2] ss:$0 sm:$0xff] }
  0x19   :  { %54 = vadd.xlane.f32.xlu1 %v53_v6  ;;  %48 = vadd.xlane.f32.xlu0 %v47_v7  ;;  %v99_v25 = vadd.s32 4294967288, %v94_v22  ;;  %v97_v32 = vsub.s32 %v94_v22, %v557_v26  ;;  %vm225_vm7 = vcmask 1041408   ;;  %vm221_vm8 = vcmask 15360   ;;  %v384_v3 = vld [vmem:[%s613_s4] ss:$0 sm:$0xff]  ;;  %s473_s2 = smov [#allocation5]  }
  0x1a   :  { %407 = vmatpush3.bf16.msra.mxu0 %v406_v18  ;;  %401 = vmatpush3.msk.msra.mxu1 %vm225_vm7, %v213_v58  ;;  %v318_v18 = vsub.s32 1, %v557_v26  ;;  %v329_v19 = vsub.s32 2, %v557_v26  ;;  %v340_v22 = vsub.s32 3, %v557_v26  ;;  %s370_s3 = sshll.u32 %s473_s2, 4  ;;  %s371_s3 = int_to_ptr.vmem [resolvable:$true] %s370_s3 }
  0x1b   :  { %v102_v29 = vsub.s32 %v99_v25, %v557_v26  ;;  %s441_s4 = scalar_lea.vmem %s371_s3, 1024  ;;  %p446_p9 = scmp.lt.s32.totalorder %s371_s3, %s371_s3 }
  0x1c   :  { %p442_p8 = scmp.ne.s32.totalorder %s371_s3, %s441_s4  ;;  %p447_p10 = scmp.lt.s32.totalorder %s441_s4, %s441_s4 }
  0x1d   :  { %60 = vadd.xlane.f32.xlu1 %v59_v10  ;;  %57 = vadd.xlane.f32.xlu0 %v56_v11 }
  0x1e   :  { %p448_p11 = por %p447_p10, %p446_p9 }
  0x20   :  { %p449_p12 = pnand %p448_p11, %p442_p8 }
  0x21   :  { %66 = vadd.xlane.f32.xlu1 %v65_v14  ;;  %63 = vadd.xlane.f32.xlu0 %v62_v15  ;;  %v307_v15 = vsub.s32 0, %v557_v26 }
  0xa2   :  { %v52_v23 = vpop.xlane.xlu1 %51  ;;  %v46_v24 = vpop.xlane.xlu0 %45 }
  0xa3   :  { %v70_v33 = vmul.f32 0.015625, %v52_v23  ;;  %v68_v34 = vmul.f32 0.015625, %v46_v24 }
  0xa5   :  { %v109_v41 = vrot.slane %v70_v33, %v97_v32  ;;  %v98_v42 = vrot.slane %v68_v34, %v97_v32 }
  0xa6   :  { %v55_v27 = vpop.xlane.xlu1 %54  ;;  %v49_v28 = vpop.xlane.xlu0 %48 }
  0xa7   :  { %v71_v30 = vmul.f32 0.015625, %v55_v27  ;;  %v69_v31 = vmul.f32 0.015625, %v49_v28 }
  0xa9   :  { %v113_v37 = vrot.slane %v71_v30, %v102_v29  ;;  %v103_v38 = vrot.slane %v69_v31, %v102_v29 }
  0xaa   :  { %v61_v35 = vpop.xlane.xlu1 %60  ;;  %v58_v36 = vpop.xlane.xlu0 %57 }
  0xab   :  { %v73_v39 = vmul.f32 0.015625, %v61_v35  ;;  %v72_v40 = vmul.f32 0.015625, %v58_v36  ;;  %v114_v47 = vsel %vm104_vm2, %v113_v37, %v109_v41  ;;  %v105_v48 = vsel %vm104_vm2, %v103_v38, %v98_v42 }
  0xac   :  { %v134_v54 = vsel %vm133_vm3, %v114_v47, %v105_v48 }
  0xad   :  { %v122_v43 = vrot.slane %v73_v39, %v102_v29  ;;  %v118_v44 = vrot.slane %v72_v40, %v97_v32 }
  0xae   :  { %v67_v45 = vpop.xlane.xlu1 %66  ;;  %v64_v46 = vpop.xlane.xlu0 %63 }
  0xaf   :  { %v75_v49 = vmul.f32 0.015625, %v67_v45  ;;  %v74_v50 = vmul.f32 0.015625, %v64_v46  ;;  %v123_v51 = vsel %vm104_vm2, %v122_v43, %v118_v44 }
  0xb0   :  { %v136_v56 = vsel %vm135_vm4, %v123_v51, %v134_v54 }
  0xb1   :  { %v131_v52 = vrot.slane %v75_v49, %v102_v29  ;;  %v127_v53 = vrot.slane %v74_v50, %v97_v32 }
  0xb3   :  { %v132_v55 = vsel %vm104_vm2, %v131_v52, %v127_v53 }
  0xb4   :  { %v138_v57 = vsel %vm137_vm5, %v132_v55, %v136_v56 }
  0xb5   :  { %398 = vmatmul.mubr.msk.f32.vlgmr.msra.gmra.mrb[0].mxu0 %vm139_vm6, %v138_v57 }
 0x188   :  { %v208_v60 = vpop.f32.mrb[0].mxu0 }
 0x189   :  { %v209_v61 = vadd.f32 %v382_v59, %v208_v60  ;;  %v399_v62 = vpop.f32.mrb[1].mxu0 }
 0x18b   :  { %v212_v63 = vmax.f32 %v209_v61, 0.0 }
 0x18d   :  { %403 = vmatmul.mubr.msk.f32.vlgmr.msra.gmra.mrb[0].mxu1 %vm221_vm8, %v212_v63 }
 0x260   :  { %v295_v4 = vpop.f32.mrb[0].mxu1 }
 0x261   :  { %v296_v6 = vadd.f32 %v384_v3, %v295_v4  ;;  %v404_v7 = vpop.f32.mrb[1].mxu1 }
 0x263   :  { %v387_v10 = vmul.f32 -1.442695, %v296_v6 }
 0x265   :  { %415 = vpow2.f32 %v387_v10 }
 0x26f   :  { %v416_v11 = vpop.eup %415 }
 0x270   :  { %v302_v14 = vadd.f32 1.0, %v416_v11 }
 0x272   :  { %417 = vrcp.f32 %v302_v14 }
 0x27c   :  { %v418_v16 = vpop.eup %417 }
 0x27d   :  { %v308_v17 = vrot.slane %v418_v16, %v307_v15  ;;  %v319_v20 = vrot.slane %v418_v16, %v318_v18  ;;  %v330_v21 = vrot.slane %v418_v16, %v329_v19  ;;  %v341_v23 = vrot.slane %v418_v16, %v340_v22 }
 0x27f   :  { %314 = vbcast.lane.b32.xlu1 %v308_v17, 264  ;;  %310 = vbcast.lane.b32.xlu0 %v308_v17, 256 }
 0x283   :  { %321 = vbcast.lane.b32.xlu1 %v319_v20, 256  ;;  %332 = vbcast.lane.b32.xlu0 %v330_v21, 256 }
 0x287   :  { %325 = vbcast.lane.b32.xlu1 %v319_v20, 264  ;;  %343 = vbcast.lane.b32.xlu0 %v341_v23, 256 }
 0x28b   :  { %336 = vbcast.lane.b32.xlu1 %v330_v21, 264 }
 0x28f   :  { %347 = vbcast.lane.b32.xlu1 %v341_v23, 264 }
 0x2f1   :  { %v315_v24 = vpop.permute.xlu1 %314  ;;  %v311_v25 = vpop.permute.xlu0 %310 }
 0x2f2   :  { %v350_v27 = vmul.f32 %v315_v24, %v529_v5  ;;  %v349_v28 = vmul.f32 %v311_v25, %v521_v1 }
 0x2f4   :  { %358 = vst.msk [vmem:[#allocation5 + $0x8] sm:$0xff] %vm43_vm0, %v350_v27  ;;  %357 = vst.msk [vmem:[#allocation5] sm:$0xff] %vm43_vm0, %v349_v28 }
 0x2f5   :  { %v322_v29 = vpop.permute.xlu1 %321  ;;  %v333_v30 = vpop.permute.xlu0 %332 }
 0x2f6   :  { %v351_v26 = vmul.f32 %v322_v29, %v519_v0  ;;  %v353_v31 = vmul.f32 %v333_v30, %v537_v9 }
 0x2f8   :  { %359 = vst.msk [vmem:[#allocation5 + $0x10] sm:$0xff] %vm43_vm0, %v351_v26  ;;  %361 = vst.msk [vmem:[#allocation5 + $0x20] sm:$0xff] %vm43_vm0, %v353_v31 }
 0x2f9   :  { %v326_v32 = vpop.permute.xlu1 %325  ;;  %v344_v33 = vpop.permute.xlu0 %343 }
 0x2fa   :  { %v352_v5 = vmul.f32 %v326_v32, %v523_v2  ;;  %v355_v1 = vmul.f32 %v344_v33, %v545_v13 }
 0x2fc   :  { %360 = vst.msk [vmem:[#allocation5 + $0x18] sm:$0xff] %vm43_vm0, %v352_v5  ;;  %363 = vst.msk [vmem:[#allocation5 + $0x30] sm:$0xff] %vm43_vm0, %v355_v1 }
 0x2fd   :  { %v337_v34 = vpop.permute.xlu1 %336 }
 0x2fe   :  { %v354_v35 = vmul.f32 %v337_v34, %v535_v8 }
 0x300   :  { %362 = vst.msk [vmem:[#allocation5 + $0x28] sm:$0xff] %vm43_vm0, %v354_v35 }
 0x301   :  { %v348_v0 = vpop.permute.xlu1 %347 }
 0x302   :  { %v356_v9 = vmul.f32 %v348_v0, %v543_v12 }
 0x304   :  { %364 = vst.msk [vmem:[#allocation5 + $0x38] sm:$0xff] %vm43_vm0, %v356_v9 }
 0x305   :  { %452 = shalt.err (!%p449_p12)
}
 0x306   :  { %s453_s17 = scalar_lea.hbm %s614_s5, 1024 }
 0x307   :  { %p454_p13 = scmp.ne.s32.totalorder %s614_s5, %s453_s17  ;;  %p457_p0 = scmp.lt.u32.totalorder %s453_s17, %s614_s5 }
 0x309   :  { %p459_p1 = pnand %p457_p0, %p454_p13 }
 0x30b   :  { %462 = shalt.err (!%p459_p1)
}
 0x30c   :  { %376 = dma.vmem_to_hbm [thread:$0]  %s371_s3, 1024, %s614_s5, [#allocation4], %s468_s28, %s468_s28, %s469_s29  }
 0x30d   :  { %465 = dma.done.wait [#allocation4], 1024  }
 0x30e   :  { %466 = vsyncadd [#allocation4], 4294966272 }
 0x30f   :  { %380 = vsyncpa [#allocation3], 1 }
 0x310   :  { %381 = vsyncpa [#allocation4], 1 }

</bundles_post_ra>
